<compile_context>
chip_gen: v7x
topology: tpu7x:2x2x1
jax: 0.10.0
libtpu: 0.0.40
codegen_flags: <defaults>
</compile_context>

<pallas_src>
import numpy as np
import jax
import jax.numpy as jnp
from jax.experimental import pallas as pl
from jax.experimental.pallas import tpu as pltpu


def _round_up(x, m):
    return (x + m - 1) // m * m


def _sort_node2pin_kernel(vals_ref, cnt_ref, pos_ref):
    """Masked per-node arg-min over the pin (sublane) axis.

    vals_ref : (P, TN) f32/i32 -- sorted_pin_map value of each pin slot
    cnt_ref  : (1, TN) i32     -- node degree
    pos_ref  : (1, TN) i32     -- winning slot index per node (lane-dense)
    """
    vals = vals_ref[...]
    cnt = cnt_ref[...]
    P = vals.shape[0]

    if jnp.issubdtype(vals.dtype, jnp.floating):
        big = jnp.array(jnp.inf, dtype=vals.dtype)
    else:
        big = jnp.array(jnp.iinfo(vals.dtype).max, dtype=vals.dtype)

    row = jax.lax.broadcasted_iota(jnp.int32, vals.shape, 0)
    masked = jnp.where(row < cnt, vals, big)                 # pad slots -> +inf
    minval = jnp.min(masked, axis=0, keepdims=True)          # (1, TN)
    # first slot achieving the minimum (matches the strict '<' update in C++)
    pos = jnp.min(jnp.where(masked == minval, row, P), axis=0, keepdims=True)
    pos_ref[...] = pos.astype(jnp.int32)


class SortNode2Pin:
    """JAX/Pallas port of dreamplacefpga SortNode2Pin (forward only)."""

    _TARGET_TILE_BYTES = 2 << 20  # target size of one value tile (single buffer)

    def __init__(self, flat_node2pin_start, flat_node2pin, num_nodes):
        start = np.asarray(flat_node2pin_start, dtype=np.int64)
        n2p = np.asarray(flat_node2pin, dtype=np.int32)
        self.num_nodes = int(num_nodes)
        self.num_pins = int(n2p.size)

        counts = (start[1:] - start[:-1]).astype(np.int32)          # (num_nodes,)
        max_deg = int(counts.max()) if counts.size else 0

        # Pins on the SUBLANE axis: pad degree only to a multiple of 8.
        self._P = max(8, _round_up(max(max_deg, 1), 8))

        # Node-tile (lane) width: big tiles to amortize per-grid-step overhead.
        tn = max(1, self._TARGET_TILE_BYTES // (self._P * 4))
        tn = max(128, (tn // 128) * 128)
        tn = min(tn, _round_up(max(self.num_nodes, 1), 128))
        self._TN = tn
        self._N = _round_up(max(self.num_nodes, 1), tn)

        db_bytes = 2 * self._P * self._TN * 4  # double-buffered value stream
        self._vmem_limit = int(min(max(32 << 20, 2 * db_bytes + (2 << 20)), 48 << 20))
        # TODO(synk): for pathological max node degree (> ~24k pins/node) add a
        # pin-chunk grid axis with running-min VMEM scratch instead of growing P.

        # densify CSR -> [P, N] pin-id table (static structure, numpy, built once)
        slot = np.arange(self._P, dtype=np.int64)[:, None]           # (P, 1)
        if self.num_nodes > 0 and self.num_pins > 0:
            idx = start[:-1][None, :] + slot                         # (P, num_nodes)
            valid = slot < counts[None, :]
            idx = np.where(valid, idx, 0)
            pin_ids = np.where(valid, n2p[idx], 0).astype(np.int32)
        else:
            pin_ids = np.zeros((self._P, self.num_nodes), dtype=np.int32)

        ids_pad = np.zeros((self._P, self._N), dtype=np.int32)
        ids_pad[:, : self.num_nodes] = pin_ids
        cnt_pad = np.zeros((1, self._N), dtype=np.int32)
        cnt_pad[0, : self.num_nodes] = counts

        self._pin_ids = jnp.asarray(ids_pad)   # (P, N) static table
        self._counts = jnp.asarray(cnt_pad)    # (1, N)

        P, TN, N = self._P, self._TN, self._N
        call = pl.pallas_call(
            _sort_node2pin_kernel,
            out_shape=jax.ShapeDtypeStruct((1, N), jnp.int32),
            grid_spec=pltpu.PrefetchScalarGridSpec(
                num_scalar_prefetch=0,
                grid=(N // TN,),
                in_specs=[
                    pl.BlockSpec((P, TN), lambda i: (0, i)),   # values
                    pl.BlockSpec((1, TN), lambda i: (0, i)),   # degrees
                ],
                out_specs=pl.BlockSpec((1, TN), lambda i: (0, i)),  # lane-dense
            ),
            compiler_params=pltpu.CompilerParams(
                dimension_semantics=("parallel",),
                vmem_limit_bytes=self._vmem_limit,
            ),
        )

        num_nodes_static = self.num_nodes

        def _impl(pin_ids_tbl, counts_tbl, sorted_pin_map):
            spm = sorted_pin_map
            if jnp.issubdtype(spm.dtype, jnp.floating):
                spm = spm.astype(jnp.float32)
            else:
                spm = spm.astype(jnp.int32)  # exact integer-rank comparison path
            # gather glue: value of every dense pin slot; invalid slots gather
            # pin 0 but are masked in-kernel via `row < cnt`.
            # TODO(synk): fuse this gather into the kernel (full sorted_pin_map in
            # VMEM + in-kernel take) so the dense vals array is never in HBM.
            vals = spm[pin_ids_tbl]                              # (P, N_pad)
            pos = call(vals, counts_tbl)                         # (1, N_pad) i32
            picked = jnp.take_along_axis(pin_ids_tbl, pos, axis=0)[0]  # (N_pad,)
            out = jnp.where(counts_tbl[0] > 0, picked, 0)
            return out[:num_nodes_static].astype(jnp.int32)

        self._fwd = jax.jit(_impl)

    def forward(self, sorted_pin_map):
        if self.num_pins == 0 or self.num_nodes == 0:
            return jnp.zeros((self.num_nodes,), dtype=jnp.int32)
        spm = jnp.asarray(sorted_pin_map)
        return self._fwd(self._pin_ids, self._counts, spm)
        # TODO(synk): the C++ kernel's initial minVal cap (2e7/1e8) means nodes
        # whose pin values all exceed it keep 0 there; not replicated here.

    __call__ = forward


def _reference(start, n2p, sorted_pin_map, num_nodes):
    out = np.zeros(num_nodes, dtype=np.int32)
    for i in range(num_nodes):
        minv = np.float64(1e30)
        for v in range(int(start[i]), int(start[i + 1])):
            val = sorted_pin_map[n2p[v]]
            if val < minv:
                minv = val
                out[i] = n2p[v]
    return out


if __name__ == "__main__":
    key = jax.random.PRNGKey(0)
    k_deg, k_perm, k_val = jax.random.split(key, 3)

    num_nodes = 16
    degrees = np.asarray(jax.random.randint(k_deg, (num_nodes,), 0, 7), dtype=np.int64)
    degrees[0] = 0  # exercise the empty-node path
    num_pins = int(degrees.sum())

    flat_node2pin_start = np.zeros(num_nodes + 1, dtype=np.int32)
    flat_node2pin_start[1:] = np.cumsum(degrees).astype(np.int32)
    flat_node2pin = np.asarray(
        jax.random.permutation(k_perm, num_pins), dtype=np.int32
    )
    sorted_pin_map = np.asarray(
        jax.random.uniform(k_val, (num_pins,), dtype=jnp.float32)
    )

    op = SortNode2Pin(flat_node2pin_start, flat_node2pin, num_nodes)

    # float-valued sorted_pin_map path
    out_f = jax.block_until_ready(op(jnp.asarray(sorted_pin_map)))
    ref_f = _reference(flat_node2pin_start, flat_node2pin, sorted_pin_map, num_nodes)
    np.testing.assert_array_equal(np.asarray(out_f), ref_f)

    # integer-rank sorted_pin_map path (exact i32 comparison, no f32 rounding)
    rank = np.asarray(jax.random.permutation(k_val, num_pins), dtype=np.int32)
    out_i = jax.block_until_ready(op(jnp.asarray(rank)))
    ref_i = _reference(flat_node2pin_start, flat_node2pin, rank, num_nodes)
    np.testing.assert_array_equal(np.asarray(out_i), ref_i)

    print("KERNEL_OK")
</pallas_src>

<mosaic_0001>
module attributes {stable_mosaic.version = 11 : i64} {
  func.func @_sort_node2pin_kernel(%arg0: i32, %arg1: memref<8x128xf32, #tpu.memory_space<vmem>>, %arg2: memref<1x128xi32, #tpu.memory_space<vmem>>, %arg3: memref<1x128xi32, #tpu.memory_space<vmem>>) attributes {dimension_semantics = [#tpu.dimension_semantics<parallel>], iteration_bounds = array<i64: 1>, scalar_prefetch = 0 : i64, scratch_operands = 0 : i64, tpu.core_type = #tpu.core_type<tc>, window_params = [{transform_indices = @transform_0, window_bounds = array<i64: 8, 128>}, {transform_indices = @transform_1, window_bounds = array<i64: 1, 128>}, {transform_indices = @transform_2, window_bounds = array<i64: 1, 128>}]} {
    %c0 = arith.constant 0 : index
    %c0_0 = arith.constant 0 : index
    %0 = vector.load %arg1[%c0, %c0_0] : memref<8x128xf32, #tpu.memory_space<vmem>>, vector<8x128xf32>
    %c0_1 = arith.constant 0 : index
    %c0_2 = arith.constant 0 : index
    %1 = vector.load %arg2[%c0_1, %c0_2] : memref<1x128xi32, #tpu.memory_space<vmem>>, vector<1x128xi32>
    %2 = tpu.iota {dimensions = array<i32: 0>} : vector<8x128xi32>
    %3 = vector.broadcast %1 : vector<1x128xi32> to vector<8x128xi32>
    %4 = arith.cmpi slt, %2, %3 : vector<8x128xi32>
    %cst = arith.constant 0x7F800000 : f32
    %5 = vector.broadcast %cst : f32 to vector<8x128xf32>
    %6 = arith.select %4, %0, %5 : vector<8x128xi1>, vector<8x128xf32>
    %cst_3 = arith.constant dense<0x7F800000> : vector<128xf32>
    %7 = vector.multi_reduction <minimumf>, %6, %cst_3 [0] : vector<8x128xf32> to vector<128xf32>
    %8 = vector.shape_cast %7 : vector<128xf32> to vector<1x128xf32>
    %9 = vector.broadcast %8 : vector<1x128xf32> to vector<8x128xf32>
    %10 = arith.cmpf oeq, %6, %9 : vector<8x128xf32>
    %c8_i32 = arith.constant 8 : i32
    %11 = vector.broadcast %c8_i32 : i32 to vector<8x128xi32>
    %12 = arith.select %10, %2, %11 : vector<8x128xi1>, vector<8x128xi32>
    %cst_4 = arith.constant dense<2147483647> : vector<128xi32>
    %13 = vector.multi_reduction <minsi>, %12, %cst_4 [0] : vector<8x128xi32> to vector<128xi32>
    %14 = vector.shape_cast %13 : vector<128xi32> to vector<1x128xi32>
    %c0_5 = arith.constant 0 : index
    %c0_6 = arith.constant 0 : index
    %15 = vector.load %arg3[%c0_5, %c0_6] : memref<1x128xi32, #tpu.memory_space<vmem>>, vector<1x128xi32>
    tpu.vector_store %arg3[%c0_5, %c0_6], %14 {strides = array<i32>} : memref<1x128xi32, #tpu.memory_space<vmem>>, vector<1x128xi32>,
    return
  }
  func.func @transform_0(%arg0: i32) -> (i32, i32) {
    %c0_i32 = arith.constant 0 : i32
    %c0_i32_0 = arith.constant 0 : i32
    return %c0_i32, %arg0 : i32, i32
  }
  func.func @transform_1(%arg0: i32) -> (i32, i32) {
    %c0_i32 = arith.constant 0 : i32
    %c0_i32_0 = arith.constant 0 : i32
    return %c0_i32, %arg0 : i32, i32
  }
  func.func @transform_2(%arg0: i32) -> (i32, i32) {
    %c0_i32 = arith.constant 0 : i32
    %c0_i32_0 = arith.constant 0 : i32
    return %c0_i32, %arg0 : i32, i32
  }
}

</mosaic_0001>

<bundles_post_ra>
// kernel: _impl.1
= control target key start
LH: loop header
LB: loop body
LE: loop exit
PB: predicated region body
PF: predicated region fallthrough
CT: control target
= control target key end

     0   :  { %v13_v0 = vlaneseq  ;;  %s68_s0 = inlined_call_operand.vmem [shape: f32[8,128], index: 0, kind: input, shape index: {}]   ;;  %s69_s1 = inlined_call_operand.vmem [shape: s32[1,128], index: 1, kind: input, shape index: {}]   ;;  %s70_s2 = inlined_call_operand.vmem [shape: s32[1,128], index: 2, kind: output, shape index: {}]  }
   0x1   :  { %v43_v1 = vld [vmem:[%s69_s1] ss:$0 sm:$0xff] }
   0x2   :  { %v11_v2 = vld [vmem:[%s68_s0] sm:$0xff]  ;;  %v14_v3 = vshrl.u32 %v13_v0, 7 }
   0x4   :  { %vm19_vm0 = vcmp.lt.s32.totalorder %v14_v3, %v43_v1 }
   0x5   :  { %v20_v4 = vsel %vm19_vm0, %v11_v2, inf }
   0x6   :  { %v21_v5 = vrot.slane %v20_v4, 4 }
   0x8   :  { %v22_v6 = vmin.f32 %v20_v4, %v21_v5 }
   0xa   :  { %v23_v7 = vrot.slane %v22_v6, 2 }
   0xc   :  { %v24_v8 = vmin.f32 %v22_v6, %v23_v7 }
   0xe   :  { %v25_v9 = vrot.slane %v24_v8, 1 }
  0x10   :  { %v26_v10 = vmin.f32 %v24_v8, %v25_v9 }
  0x12   :  { %vm27_vm1 = vcmp.eq.f32.partialorder %v20_v4, %v26_v10 }
  0x13   :  { %v28_v11 = vsel %vm27_vm1, %v14_v3, 8 }
  0x14   :  { %v29_v12 = vrot.slane %v28_v11, 4 }
  0x16   :  { %vm30_vm2 = vcmp.lt.s32.totalorder %v28_v11, %v29_v12 }
  0x17   :  { %v31_v13 = vsel %vm30_vm2, %v28_v11, %v29_v12 }
  0x18   :  { %v32_v14 = vrot.slane %v31_v13, 2 }
  0x1a   :  { %vm33_vm3 = vcmp.lt.s32.totalorder %v31_v13, %v32_v14 }
  0x1b   :  { %v34_v15 = vsel %vm33_vm3, %v31_v13, %v32_v14 }
  0x1c   :  { %v35_v16 = vrot.slane %v34_v15, 1 }
  0x1e   :  { %vm36_vm4 = vcmp.lt.s32.totalorder %v34_v15, %v35_v16 }
  0x1f   :  { %v37_v17 = vsel %vm36_vm4, %v34_v15, %v35_v16 }
  0x20   :  { %38 = vst [vmem:[%s70_s2] sm:$0x1] %v37_v17 }

</bundles_post_ra>
